<compile_context>
chip_gen: v6e
topology: v6e:2x2x1
jax: 0.10.0
libtpu: 0.0.40
codegen_flags: <defaults>
</compile_context>

<pallas_src>
import functools

import jax
import jax.numpy as jnp
from jax.experimental import pallas as pl
from jax.experimental.pallas import tpu as pltpu

IN_DIM = 28 * 28   # 784
H1 = 256
H2 = 128


def _ae_kernel(x_ref,
               w1_ref, b1_ref,
               w2_ref, b2_ref,
               w3_ref, b3_ref,
               w4_ref, b4_ref,
               o_ref):
    # bf16 LHS/RHS on the MXU, f32 accumulation; bias adds / ReLUs in f32.
    x = x_ref[...].astype(jnp.bfloat16)                                   # (tb, 784)
    # encoder
    h = jnp.dot(x, w1_ref[...], preferred_element_type=jnp.float32) + b1_ref[...]
    h = jnp.maximum(h, 0.0).astype(jnp.bfloat16)                          # (tb, 256)
    h = jnp.dot(h, w2_ref[...], preferred_element_type=jnp.float32) + b2_ref[...]
    h = jnp.maximum(h, 0.0).astype(jnp.bfloat16)                          # (tb, 128)
    # decoder
    h = jnp.dot(h, w3_ref[...], preferred_element_type=jnp.float32) + b3_ref[...]
    h = jnp.maximum(h, 0.0).astype(jnp.bfloat16)                          # (tb, 256)
    h = jnp.dot(h, w4_ref[...], preferred_element_type=jnp.float32) + b4_ref[...]
    o_ref[...] = h.astype(o_ref.dtype)                                    # (tb, 784)


def _device_config():
    """Generation-aware tile cap / VMEM limit (host-side, outside jit)."""
    kind = ""
    try:
        kind = jax.devices()[0].device_kind.lower()
    except Exception:
        pass
    if "v5" in kind or "v6" in kind:
        # 128 MiB physical VMEM, single TensorCore: one big tile, generous limit.
        return {"tile_cap": 2048, "vmem_limit": 96 * 1024 * 1024, "two_cores": False}
    # v7x (64 MiB VMEM per TC, 2 TCs) or unknown: stay conservative.
    return {"tile_cap": 1024, "vmem_limit": 48 * 1024 * 1024, "two_cores": True}


def _pick_tile_b(B, tile_cap, two_cores):
    """Whole-batch tile on single-TC parts (grid steps are a serial loop there);
    split in two on v7x only when each tile keeps >= 256 rows (full MXU height).
    Always a multiple of 8 (sublanes)."""
    whole = max(8, pl.cdiv(B, 8) * 8)
    if two_cores and B >= 512:
        half = pl.cdiv(B, 2)
        tile = max(256, pl.cdiv(half, 256) * 256)
    else:
        tile = whole
    return min(tile, tile_cap)


@functools.partial(jax.jit, static_argnames=("tile_b", "vmem_limit_bytes"))
def _forward_impl(x, w1, b1, w2, b2, w3, b3, w4, b4, *, tile_b, vmem_limit_bytes):
    B, D = x.shape
    n_tiles = pl.cdiv(B, tile_b)     # no host-side pad; partial last block is masked

    # Weights/biases are small (<2 MiB total in bf16) -> fully resident in VMEM
    # across all grid steps (constant index_map pins block (0, 0)); only the batch
    # dimension is tiled.
    full = lambda shape: pl.BlockSpec(shape, lambda i: (0, 0))

    grid_spec = pltpu.PrefetchScalarGridSpec(
        num_scalar_prefetch=0,
        grid=(n_tiles,),
        in_specs=[
            pl.BlockSpec((tile_b, IN_DIM), lambda i: (i, 0)),   # x tile
            full(w1.shape), full(b1.shape),
            full(w2.shape), full(b2.shape),
            full(w3.shape), full(b3.shape),
            full(w4.shape), full(b4.shape),
        ],
        out_specs=pl.BlockSpec((tile_b, IN_DIM), lambda i: (i, 0)),
    )

    flops = 2 * B * (IN_DIM * H1 + H1 * H2 + H2 * H1 + H1 * IN_DIM)
    weight_bytes = 2 * (IN_DIM * H1 + H1 * H2 + H2 * H1 + H1 * IN_DIM)    # bf16
    bias_bytes = 4 * (H1 + H2 + H1 + IN_DIM)                              # f32
    io_bytes = 2 * B * IN_DIM * x.dtype.itemsize                          # x + out
    cost = pl.CostEstimate(flops=flops, transcendentals=0,
                           bytes_accessed=io_bytes + weight_bytes + bias_bytes)

    return pl.pallas_call(
        _ae_kernel,
        out_shape=jax.ShapeDtypeStruct((B, IN_DIM), x.dtype),
        grid_spec=grid_spec,
        compiler_params=pltpu.CompilerParams(
            dimension_semantics=("parallel",),
            vmem_limit_bytes=vmem_limit_bytes),
        cost_estimate=cost,
    )(x, w1, b1, w2, b2, w3, b3, w4, b4)


def autoencoder_forward(x, params):
    """x: (B, 784), bf16 recommended (f32 accepted). params: output of prepare_params().
    Returns (B, 784) in x.dtype."""
    B, D = x.shape
    assert D == IN_DIM
    cfg = _device_config()
    tile_b = _pick_tile_b(B, cfg["tile_cap"], cfg["two_cores"])
    return _forward_impl(
        x,
        params["w1"], params["b1"], params["w2"], params["b2"],
        params["w3"], params["b3"], params["w4"], params["b4"],
        tile_b=tile_b, vmem_limit_bytes=cfg["vmem_limit"])


def init_params(key):
    """Deterministic f32 init matching nn.Linear's U(-1/sqrt(fan_in), 1/sqrt(fan_in)).
    Weights stored as (in_features, out_features) — i.e. torch weight transposed."""
    dims = [(IN_DIM, H1), (H1, H2), (H2, H1), (H1, IN_DIM)]
    params = {}
    for idx, (fan_in, fan_out) in enumerate(dims, start=1):
        key, kw, kb = jax.random.split(key, 3)
        bound = 1.0 / (fan_in ** 0.5)
        params[f"w{idx}"] = jax.random.uniform(
            kw, (fan_in, fan_out), jnp.float32, -bound, bound)
        params[f"b{idx}"] = jax.random.uniform(
            kb, (1, fan_out), jnp.float32, -bound, bound)
    return params


def prepare_params(params_f32):
    """One-time conversion to kernel-ready dtypes (do this OUTSIDE the forward):
    bf16 weights (MXU inputs), f32 biases (added to the f32 accumulator)."""
    out = {}
    for idx in range(1, 5):
        out[f"w{idx}"] = params_f32[f"w{idx}"].astype(jnp.bfloat16)
        out[f"b{idx}"] = params_f32[f"b{idx}"].astype(jnp.float32)
    return out


def _reference_forward(x, params):
    h = jnp.maximum(x @ params["w1"] + params["b1"], 0.0)
    h = jnp.maximum(h @ params["w2"] + params["b2"], 0.0)
    h = jnp.maximum(h @ params["w3"] + params["b3"], 0.0)
    return h @ params["w4"] + params["b4"]


if __name__ == "__main__":
    key = jax.random.PRNGKey(0)
    kx, kx2, kp = jax.random.split(key, 3)

    params_f32 = init_params(kp)
    params = prepare_params(params_f32)   # bf16 weights, converted once outside jit

    # bf16 I/O contract (halves streamed HBM bytes on this mem-bound kernel).
    B = 16
    x = jax.random.normal(kx, (B, IN_DIM), jnp.float32).astype(jnp.bfloat16)
    out = jax.block_until_ready(autoencoder_forward(x, params))
    ref = _reference_forward(x.astype(jnp.float32), params_f32)
    assert out.shape == (B, IN_DIM) and out.dtype == jnp.bfloat16
    err = float(jnp.max(jnp.abs(out.astype(jnp.float32) - ref)))
    assert err < 5e-2, err

    # Ragged batch exercises the pad-free cdiv + masked partial-last-block path.
    B2 = 10
    x2 = jax.random.normal(kx2, (B2, IN_DIM), jnp.float32).astype(jnp.bfloat16)
    out2 = jax.block_until_ready(autoencoder_forward(x2, params))
    ref2 = _reference_forward(x2.astype(jnp.float32), params_f32)
    assert out2.shape == (B2, IN_DIM)
    err2 = float(jnp.max(jnp.abs(out2.astype(jnp.float32) - ref2)))
    assert err2 < 5e-2, err2

    print("KERNEL_OK")
</pallas_src>

<mosaic_0001>
module attributes {stable_mosaic.version = 11 : i64} {
  func.func @_ae_kernel(%arg0: i32, %arg1: memref<16x784xbf16, #tpu.memory_space<vmem>>, %arg2: memref<784x256xbf16, #tpu.memory_space<vmem>>, %arg3: memref<1x256xf32, #tpu.memory_space<vmem>>, %arg4: memref<256x128xbf16, #tpu.memory_space<vmem>>, %arg5: memref<1x128xf32, #tpu.memory_space<vmem>>, %arg6: memref<128x256xbf16, #tpu.memory_space<vmem>>, %arg7: memref<1x256xf32, #tpu.memory_space<vmem>>, %arg8: memref<256x784xbf16, #tpu.memory_space<vmem>>, %arg9: memref<1x784xf32, #tpu.memory_space<vmem>>, %arg10: memref<16x784xbf16, #tpu.memory_space<vmem>>) attributes {dimension_semantics = [#tpu.dimension_semantics<parallel>], iteration_bounds = array<i64: 1>, scalar_prefetch = 0 : i64, scratch_operands = 0 : i64, tpu.core_type = #tpu.core_type<tc>, window_params = [{transform_indices = @transform_0, window_bounds = array<i64: 16, 784>}, {pipeline_mode = #tpu.pipeline_mode<synchronous>, transform_indices = @transform_1, window_bounds = array<i64: 784, 256>}, {pipeline_mode = #tpu.pipeline_mode<synchronous>, transform_indices = @transform_2, window_bounds = array<i64: 1, 256>}, {pipeline_mode = #tpu.pipeline_mode<synchronous>, transform_indices = @transform_3, window_bounds = array<i64: 256, 128>}, {pipeline_mode = #tpu.pipeline_mode<synchronous>, transform_indices = @transform_4, window_bounds = array<i64: 1, 128>}, {pipeline_mode = #tpu.pipeline_mode<synchronous>, transform_indices = @transform_5, window_bounds = array<i64: 128, 256>}, {pipeline_mode = #tpu.pipeline_mode<synchronous>, transform_indices = @transform_6, window_bounds = array<i64: 1, 256>}, {pipeline_mode = #tpu.pipeline_mode<synchronous>, transform_indices = @transform_7, window_bounds = array<i64: 256, 784>}, {pipeline_mode = #tpu.pipeline_mode<synchronous>, transform_indices = @transform_8, window_bounds = array<i64: 1, 784>}, {transform_indices = @transform_9, window_bounds = array<i64: 16, 784>}]} {
    %c0 = arith.constant 0 : index
    %c0_0 = arith.constant 0 : index
    %0 = vector.load %arg1[%c0, %c0_0] : memref<16x784xbf16, #tpu.memory_space<vmem>>, vector<16x784xbf16>
    %c0_1 = arith.constant 0 : index
    %c0_2 = arith.constant 0 : index
    %1 = vector.load %arg2[%c0_1, %c0_2] : memref<784x256xbf16, #tpu.memory_space<vmem>>, vector<784x256xbf16>
    %cst = arith.constant dense<0.000000e+00> : vector<16x256xf32>
    %2 = tpu.matmul %0, %1, %cst {dimension_numbers = #tpu.dot_dimension_numbers<[1], [0], [0], [1], [0, 0, 1, 1], [], []>} : vector<16x784xbf16>, vector<784x256xbf16>, vector<16x256xf32> -> vector<16x256xf32>
    %c0_3 = arith.constant 0 : index
    %c0_4 = arith.constant 0 : index
    %3 = vector.load %arg3[%c0_3, %c0_4] : memref<1x256xf32, #tpu.memory_space<vmem>>, vector<1x256xf32>
    %4 = vector.broadcast %3 : vector<1x256xf32> to vector<16x256xf32>
    %5 = arith.addf %2, %4 : vector<16x256xf32>
    %cst_5 = arith.constant 0.000000e+00 : f32
    %6 = vector.broadcast %cst_5 : f32 to vector<16x256xf32>
    %7 = arith.maximumf %5, %6 : vector<16x256xf32>
    %8 = arith.truncf %7 : vector<16x256xf32> to vector<16x256xbf16>
    %c0_6 = arith.constant 0 : index
    %c0_7 = arith.constant 0 : index
    %9 = vector.load %arg4[%c0_6, %c0_7] : memref<256x128xbf16, #tpu.memory_space<vmem>>, vector<256x128xbf16>
    %cst_8 = arith.constant dense<0.000000e+00> : vector<16x128xf32>
    %10 = tpu.matmul %8, %9, %cst_8 {dimension_numbers = #tpu.dot_dimension_numbers<[1], [0], [0], [1], [0, 0, 1, 1], [], []>} : vector<16x256xbf16>, vector<256x128xbf16>, vector<16x128xf32> -> vector<16x128xf32>
    %c0_9 = arith.constant 0 : index
    %c0_10 = arith.constant 0 : index
    %11 = vector.load %arg5[%c0_9, %c0_10] : memref<1x128xf32, #tpu.memory_space<vmem>>, vector<1x128xf32>
    %12 = vector.broadcast %11 : vector<1x128xf32> to vector<16x128xf32>
    %13 = arith.addf %10, %12 : vector<16x128xf32>
    %cst_11 = arith.constant 0.000000e+00 : f32
    %14 = vector.broadcast %cst_11 : f32 to vector<16x128xf32>
    %15 = arith.maximumf %13, %14 : vector<16x128xf32>
    %16 = arith.truncf %15 : vector<16x128xf32> to vector<16x128xbf16>
    %c0_12 = arith.constant 0 : index
    %c0_13 = arith.constant 0 : index
    %17 = vector.load %arg6[%c0_12, %c0_13] : memref<128x256xbf16, #tpu.memory_space<vmem>>, vector<128x256xbf16>
    %cst_14 = arith.constant dense<0.000000e+00> : vector<16x256xf32>
    %18 = tpu.matmul %16, %17, %cst_14 {dimension_numbers = #tpu.dot_dimension_numbers<[1], [0], [0], [1], [0, 0, 1, 1], [], []>} : vector<16x128xbf16>, vector<128x256xbf16>, vector<16x256xf32> -> vector<16x256xf32>
    %c0_15 = arith.constant 0 : index
    %c0_16 = arith.constant 0 : index
    %19 = vector.load %arg7[%c0_15, %c0_16] : memref<1x256xf32, #tpu.memory_space<vmem>>, vector<1x256xf32>
    %20 = vector.broadcast %19 : vector<1x256xf32> to vector<16x256xf32>
    %21 = arith.addf %18, %20 : vector<16x256xf32>
    %cst_17 = arith.constant 0.000000e+00 : f32
    %22 = vector.broadcast %cst_17 : f32 to vector<16x256xf32>
    %23 = arith.maximumf %21, %22 : vector<16x256xf32>
    %24 = arith.truncf %23 : vector<16x256xf32> to vector<16x256xbf16>
    %c0_18 = arith.constant 0 : index
    %c0_19 = arith.constant 0 : index
    %25 = vector.load %arg8[%c0_18, %c0_19] : memref<256x784xbf16, #tpu.memory_space<vmem>>, vector<256x784xbf16>
    %cst_20 = arith.constant dense<0.000000e+00> : vector<16x784xf32>
    %26 = tpu.matmul %24, %25, %cst_20 {dimension_numbers = #tpu.dot_dimension_numbers<[1], [0], [0], [1], [0, 0, 1, 1], [], []>} : vector<16x256xbf16>, vector<256x784xbf16>, vector<16x784xf32> -> vector<16x784xf32>
    %c0_21 = arith.constant 0 : index
    %c0_22 = arith.constant 0 : index
    %27 = vector.load %arg9[%c0_21, %c0_22] : memref<1x784xf32, #tpu.memory_space<vmem>>, vector<1x784xf32>
    %28 = vector.broadcast %27 : vector<1x784xf32> to vector<16x784xf32>
    %29 = arith.addf %26, %28 : vector<16x784xf32>
    %30 = arith.truncf %29 : vector<16x784xf32> to vector<16x784xbf16>
    %c0_23 = arith.constant 0 : index
    %c0_24 = arith.constant 0 : index
    %31 = vector.load %arg10[%c0_23, %c0_24] : memref<16x784xbf16, #tpu.memory_space<vmem>>, vector<16x784xbf16>
    tpu.vector_store %arg10[%c0_23, %c0_24], %30 {strides = array<i32>} : memref<16x784xbf16, #tpu.memory_space<vmem>>, vector<16x784xbf16>,
    return
  }
  func.func @transform_0(%arg0: i32) -> (i32, i32) {
    %c0_i32 = arith.constant 0 : i32
    %c0_i32_0 = arith.constant 0 : i32
    return %arg0, %c0_i32 : i32, i32
  }
  func.func @transform_1(%arg0: i32) -> (i32, i32) {
    %c0_i32 = arith.constant 0 : i32
    %c0_i32_0 = arith.constant 0 : i32
    %c0_i32_1 = arith.constant 0 : i32
    return %c0_i32, %c0_i32_0 : i32, i32
  }
  func.func @transform_2(%arg0: i32) -> (i32, i32) {
    %c0_i32 = arith.constant 0 : i32
    %c0_i32_0 = arith.constant 0 : i32
    %c0_i32_1 = arith.constant 0 : i32
    return %c0_i32, %c0_i32_0 : i32, i32
  }
  func.func @transform_3(%arg0: i32) -> (i32, i32) {
    %c0_i32 = arith.constant 0 : i32
    %c0_i32_0 = arith.constant 0 : i32
    %c0_i32_1 = arith.constant 0 : i32
    return %c0_i32, %c0_i32_0 : i32, i32
  }
  func.func @transform_4(%arg0: i32) -> (i32, i32) {
    %c0_i32 = arith.constant 0 : i32
    %c0_i32_0 = arith.constant 0 : i32
    %c0_i32_1 = arith.constant 0 : i32
    return %c0_i32, %c0_i32_0 : i32, i32
  }
  func.func @transform_5(%arg0: i32) -> (i32, i32) {
    %c0_i32 = arith.constant 0 : i32
    %c0_i32_0 = arith.constant 0 : i32
    %c0_i32_1 = arith.constant 0 : i32
    return %c0_i32, %c0_i32_0 : i32, i32
  }
  func.func @transform_6(%arg0: i32) -> (i32, i32) {
    %c0_i32 = arith.constant 0 : i32
    %c0_i32_0 = arith.constant 0 : i32
    %c0_i32_1 = arith.constant 0 : i32
    return %c0_i32, %c0_i32_0 : i32, i32
  }
  func.func @transform_7(%arg0: i32) -> (i32, i32) {
    %c0_i32 = arith.constant 0 : i32
    %c0_i32_0 = arith.constant 0 : i32
    %c0_i32_1 = arith.constant 0 : i32
    return %c0_i32, %c0_i32_0 : i32, i32
  }
  func.func @transform_8(%arg0: i32) -> (i32, i32) {
    %c0_i32 = arith.constant 0 : i32
    %c0_i32_0 = arith.constant 0 : i32
    %c0_i32_1 = arith.constant 0 : i32
    return %c0_i32, %c0_i32_0 : i32, i32
  }
  func.func @transform_9(%arg0: i32) -> (i32, i32) {
    %c0_i32 = arith.constant 0 : i32
    %c0_i32_0 = arith.constant 0 : i32
    return %arg0, %c0_i32 : i32, i32
  }
}

</mosaic_0001>

<bundles_post_ra>
// kernel: _forward_impl.1
= control target key start
LH: loop header
LB: loop body
LE: loop exit
PB: predicated region body
PF: predicated region fallthrough
CT: control target
= control target key end

     0   :  { %vm677_vm0 = vcmask 130048   ;;  %s3712_s0 = inlined_call_operand.vmem [shape: bf16[16,784], index: 0, kind: input, shape index: {}]   ;;  %s3713_s1 = inlined_call_operand.vmem [shape: bf16[784,256], index: 1, kind: input, shape index: {}]   ;;  %s3714_s2 = inlined_call_operand.vmem [shape: f32[1,256], index: 2, kind: input, shape index: {}]   ;;  %s3715_s3 = inlined_call_operand.vmem [shape: bf16[256,128], index: 3, kind: input, shape index: {}]   ;;  %s3716_s4 = inlined_call_operand.vmem [shape: f32[1,128], index: 4, kind: input, shape index: {}]   ;;  %s3717_s5 = inlined_call_operand.vmem [shape: bf16[128,256], index: 5, kind: input, shape index: {}]   ;;  %s3718_s6 = inlined_call_operand.vmem [shape: f32[1,256], index: 6, kind: input, shape index: {}]   ;;  %s3719_s7 = inlined_call_operand.vmem [shape: bf16[256,784], index: 7, kind: input, shape index: {}]   ;;  %s3720_s8 = inlined_call_operand.vmem [shape: f32[1,784], index: 8, kind: input, shape index: {}]   ;;  %s3721_s9 = inlined_call_operand.hbm [shape: bf16[16,784], index: 9, kind: output, shape index: {}]  }
   0x1   :  { %v2490_v0 = vld [vmem:[%s3713_s1 + $0x74] ss:$8 sps:$4 sm:$0xff]   ;;  %v2492_v1 = vld [vmem:[%s3713_s1 + $0x70] ss:$8 sps:$4 sm:$0xff]   ;;  %v2496_v4 = vld [vmem:[%s3713_s1 + $0x64] ss:$8 sps:$4 sm:$0xff]  }
   0x2   :  { %681 = vmatprep.subr.bf16.mxu0 %v2490_v0  ;;  %v2493_v2 = vld [vmem:[%s3713_s1 + $0x174] ss:$8 sps:$4 sm:$0xff]   ;;  %v2495_v3 = vld [vmem:[%s3713_s1 + $0x170] ss:$8 sps:$4 sm:$0xff]   ;;  %v2498_v5 = vld [vmem:[%s3713_s1 + $0x60] ss:$8 sps:$4 sm:$0xff]  }
   0x3   :  { %682 = vmatpush1.bf16.msra.mxu0 %v2492_v1  ;;  %724 = vmatprep.subr.bf16.mxu1 %v2493_v2  ;;  %v2499_v6 = vld [vmem:[%s3713_s1 + $0x164] ss:$8 sps:$4 sm:$0xff]   ;;  %v2501_v7 = vld [vmem:[%s3713_s1 + $0x160] ss:$8 sps:$4 sm:$0xff]   ;;  %v2502_v8 = vld [vmem:[%s3713_s1 + $0x54] ss:$8 sps:$4 sm:$0xff]  }
   0x4   :  { %725 = vmatpush1.bf16.msra.mxu1 %v2495_v3  ;;  %683 = vmatprep.subr.bf16.mxu0 %v2496_v4  ;;  %v2504_v9 = vld [vmem:[%s3713_s1 + $0x50] ss:$8 sps:$4 sm:$0xff]   ;;  %v2505_v10 = vld [vmem:[%s3713_s1 + $0x154] ss:$8 sps:$4 sm:$0xff]   ;;  %v2508_v11 = vld [vmem:[%s3713_s1 + $0x44] ss:$8 sps:$4 sm:$0xff]  }
   0x5   :  { %726 = vmatprep.subr.bf16.mxu1 %v2499_v6  ;;  %v2507_v12 = vld [vmem:[%s3713_s1 + $0x150] ss:$8 sps:$4 sm:$0xff]   ;;  %v2511_v13 = vld [vmem:[%s3713_s1 + $0x144] ss:$8 sps:$4 sm:$0xff]   ;;  %v2510_v14 = vld [vmem:[%s3713_s1 + $0x40] ss:$8 sps:$4 sm:$0xff]  }
   0x6   :  { %v2514_v15 = vld [vmem:[%s3713_s1 + $0x34] ss:$8 sps:$4 sm:$0xff]   ;;  %v2513_v16 = vld [vmem:[%s3713_s1 + $0x140] ss:$8 sps:$4 sm:$0xff]   ;;  %v2516_v18 = vld [vmem:[%s3713_s1 + $0x30] ss:$8 sps:$4 sm:$0xff]  }
   0x7   :  { %684 = vmatpush1.bf16.msra.mxu0 %v2498_v5  ;;  %v2517_v17 = vld [vmem:[%s3713_s1 + $0x134] ss:$8 sps:$4 sm:$0xff]   ;;  %v2520_v19 = vld [vmem:[%s3713_s1 + $0x24] ss:$8 sps:$4 sm:$0xff]   ;;  %v2519_v20 = vld [vmem:[%s3713_s1 + $0x130] ss:$8 sps:$4 sm:$0xff]  }
   0x8   :  { %685 = vmatprep.subr.bf16.mxu0 %v2502_v8  ;;  %727 = vmatpush1.bf16.msra.mxu1 %v2501_v7  ;;  %v2523_v21 = vld [vmem:[%s3713_s1 + $0x124] ss:$8 sps:$4 sm:$0xff]   ;;  %v2522_v22 = vld [vmem:[%s3713_s1 + $0x20] ss:$8 sps:$4 sm:$0xff]   ;;  %v2526_v23 = vld [vmem:[%s3713_s1 + $0x14] ss:$8 sps:$4 sm:$0xff]  }
   0x9   :  { %728 = vmatprep.subr.bf16.mxu1 %v2505_v10  ;;  %v2525_v24 = vld [vmem:[%s3713_s1 + $0x120] ss:$8 sps:$4 sm:$0xff]   ;;  %v2529_v25 = vld [vmem:[%s3713_s1 + $0x114] ss:$8 sps:$4 sm:$0xff]   ;;  %v2528_v26 = vld [vmem:[%s3713_s1 + $0x10] ss:$8 sps:$4 sm:$0xff]  }
   0xa   :  { %v2532_v27 = vld [vmem:[%s3713_s1 + $0x4] ss:$8 sps:$4 sm:$0xff]   ;;  %v2531_v28 = vld [vmem:[%s3713_s1 + $0x110] ss:$8 sps:$4 sm:$0xff]   ;;  %v2534_v30 = vld [vmem:[%s3713_s1] ss:$8 sps:$4 sm:$0xff]  }
   0xb   :  { %686 = vmatpush1.bf16.msra.mxu0 %v2504_v9  ;;  %v2535_v29 = vld [vmem:[%s3713_s1 + $0x104] ss:$8 sps:$4 sm:$0xff]   ;;  %v2538_v31 = vld [vmem:[%s3713_s1 + $0xf4] ss:$8 sps:$4 sm:$0xff]   ;;  %v2537_v32 = vld [vmem:[%s3713_s1 + $0x100] ss:$8 sps:$4 sm:$0xff]  }
   0xc   :  { %687 = vmatprep.subr.bf16.mxu0 %v2508_v11  ;;  %729 = vmatpush1.bf16.msra.mxu1 %v2507_v12  ;;  %v2541_v33 = vld [vmem:[%s3713_s1 + $0x1f4] ss:$8 sps:$4 sm:$0xff]   ;;  %v2540_v34 = vld [vmem:[%s3713_s1 + $0xf0] ss:$8 sps:$4 sm:$0xff]   ;;  %v2544_v35 = vld [vmem:[%s3713_s1 + $0xe4] ss:$8 sps:$4 sm:$0xff]  }
   0xd   :  { %730 = vmatprep.subr.bf16.mxu1 %v2511_v13  ;;  %v2543_v36 = vld [vmem:[%s3713_s1 + $0x1f0] ss:$8 sps:$4 sm:$0xff]   ;;  %v2547_v37 = vld [vmem:[%s3713_s1 + $0x1e4] ss:$8 sps:$4 sm:$0xff]   ;;  %v2546_v38 = vld [vmem:[%s3713_s1 + $0xe0] ss:$8 sps:$4 sm:$0xff]  }
   0xe   :  { %v2550_v39 = vld [vmem:[%s3713_s1 + $0xd4] ss:$8 sps:$4 sm:$0xff]   ;;  %v2549_v40 = vld [vmem:[%s3713_s1 + $0x1e0] ss:$8 sps:$4 sm:$0xff]   ;;  %v2552_v42 = vld [vmem:[%s3713_s1 + $0xd0] ss:$8 sps:$4 sm:$0xff]  }
   0xf   :  { %688 = vmatpush1.bf16.msra.mxu0 %v2510_v14  ;;  %v2553_v41 = vld [vmem:[%s3713_s1 + $0x1d4] ss:$8 sps:$4 sm:$0xff]   ;;  %v2556_v43 = vld [vmem:[%s3713_s1 + $0xc4] ss:$8 sps:$4 sm:$0xff]   ;;  %v2555_v44 = vld [vmem:[%s3713_s1 + $0x1d0] ss:$8 sps:$4 sm:$0xff]  }
  0x10   :  { %689 = vmatprep.subr.bf16.mxu0 %v2514_v15  ;;  %731 = vmatpush1.bf16.msra.mxu1 %v2513_v16  ;;  %v2559_v45 = vld [vmem:[%s3713_s1 + $0x1c4] ss:$8 sps:$4 sm:$0xff]   ;;  %v2558_v46 = vld [vmem:[%s3713_s1 + $0xc0] ss:$8 sps:$4 sm:$0xff]   ;;  %v2562_v48 = vld [vmem:[%s3713_s1 + $0xb4] ss:$8 sps:$4 sm:$0xff]  }
  0x11   :  { %732 = vmatprep.subr.bf16.mxu1 %v2517_v17  ;;  %v2587_v47 = vld [vmem:[%s3712_s0 + $0x4] ss:$28 sps:$4 sm:$0xff]   ;;  %v2565_v50 = vld [vmem:[%s3713_s1 + $0x1b4] ss:$8 sps:$4 sm:$0xff]   ;;  %v2594_v51 = vld [vmem:[%s3712_s0 + $0xc] ss:$28 sps:$4 sm:$0xff]  }
  0x12   :  { %v2561_v49 = vld [vmem:[%s3713_s1 + $0x1c0] ss:$8 sps:$4 sm:$0xff]   ;;  %713 = vmatprep.mubr.bf16.mxu0 %v2587_v47  ;;  %v2564_v52 = vld [vmem:[%s3713_s1 + $0xb0] ss:$8 sps:$4 sm:$0xff]   ;;  %v2568_v53 = vld [vmem:[%s3713_s1 + $0xa4] ss:$8 sps:$4 sm:$0xff]   ;;  %756 = vmatprep.mubr.bf16.mxu1 %v2594_v51 }
  0x13   :  { %690 = vmatpush1.bf16.msra.mxu0 %v2516_v18  ;;  %v2567_v54 = vld [vmem:[%s3713_s1 + $0x1b0] ss:$8 sps:$4 sm:$0xff]   ;;  %v2571_v55 = vld [vmem:[%s3713_s1 + $0x1a4] ss:$8 sps:$4 sm:$0xff]   ;;  %v2570_v56 = vld [vmem:[%s3713_s1 + $0xa0] ss:$8 sps:$4 sm:$0xff]  }
  0x14   :  { %691 = vmatprep.subr.bf16.mxu0 %v2520_v19  ;;  %733 = vmatpush1.bf16.msra.mxu1 %v2519_v20  ;;  %v2574_v57 = vld [vmem:[%s3713_s1 + $0x94] ss:$8 sps:$4 sm:$0xff]   ;;  %v2573_v58 = vld [vmem:[%s3713_s1 + $0x1a0] ss:$8 sps:$4 sm:$0xff]   ;;  %v2576_v60 = vld [vmem:[%s3713_s1 + $0x90] ss:$8 sps:$4 sm:$0xff]  }
  0x15   :  { %734 = vmatprep.subr.bf16.mxu1 %v2523_v21  ;;  %v2577_v59 = vld [vmem:[%s3713_s1 + $0x194] ss:$8 sps:$4 sm:$0xff]   ;;  %v2580_v61 = vld [vmem:[%s3713_s1 + $0x84] ss:$8 sps:$4 sm:$0xff]   ;;  %v2579_v62 = vld [vmem:[%s3713_s1 + $0x190] ss:$8 sps:$4 sm:$0xff]  }
  0x16   :  { %v2583_v63 = vld [vmem:[%s3713_s1 + $0x184] ss:$8 sps:$4 sm:$0xff]   ;;  %v2582_v0 = vld [vmem:[%s3713_s1 + $0x80] ss:$8 sps:$4 sm:$0xff]   ;;  %v2591_v1 = vld [vmem:[%s3713_s1 + $0x274] ss:$8 sps:$4 sm:$0xff]  }
  0x17   :  { %692 = vmatpush1.bf16.msra.mxu0 %v2522_v22  ;;  %v2588_v2 = vld [vmem:[%s3713_s1 + $0x180] ss:$8 sps:$4 sm:$0xff]   ;;  %v2589_v4 = vld [vmem:[%s3713_s1 + $0x270] ss:$8 sps:$4 sm:$0xff]   ;;  %v2597_v6 = vld [vmem:[%s3713_s1 + $0x264] ss:$8 sps:$4 sm:$0xff]  }
  0x18   :  { %693 = vmatprep.subr.bf16.mxu0 %v2526_v23  ;;  %735 = vmatpush1.bf16.msra.mxu1 %v2525_v24  ;;  %v2585_v3 = vld [vmem:[%s3712_s0] ss:$28 sps:$4 sm:$0xff]   ;;  %v2592_v5 = vld [vmem:[%s3712_s0 + $0x8] ss:$28 sps:$4 sm:$0xff]   ;;  %v2598_v11 = vld [vmem:[%s3713_s1 + $0x250] ss:$8 sps:$4 sm:$0xff]  }
  0x19   :  { %736 = vmatprep.subr.bf16.mxu1 %v2529_v25  ;;  %v2637_v7 = vld [vmem:[%s3713_s1 + $0x300] ss:$8 sps:$4 sm:$0xff]   ;;  %v2639_v8 = vld [vmem:[%s3713_s1 + $0x304] ss:$8 sps:$4 sm:$0xff]   ;;  %v2600_v10 = vld [vmem:[%s3713_s1 + $0x254] ss:$8 sps:$4 sm:$0xff]  }
  0x1a   :  { %v2595_v9 = vld [vmem:[%s3713_s1 + $0x260] ss:$8 sps:$4 sm:$0xff]   ;;  %v2869_v12 = vmov 0   ;;  %v2603_v13 = vld [vmem:[%s3713_s1 + $0x244] ss:$8 sps:$4 sm:$0xff]  }
  0x1b   :  { %694 = vmatpush1.bf16.msra.mxu0 %v2528_v26  ;;  %v2643_v14 = vld [vmem:[%s3712_s0 + $0x18] ss:$28 sps:$4 sm:$0xff]   ;;  %v2601_v16 = vld [vmem:[%s3713_s1 + $0x240] ss:$8 sps:$4 sm:$0xff]   ;;  %v2609_v19 = vld [vmem:[%s3713_s1 + $0x224] ss:$8 sps:$4 sm:$0xff]  }
  0x1c   :  { %695 = vmatprep.subr.bf16.mxu0 %v2532_v27  ;;  %737 = vmatpush1.bf16.msra.mxu1 %v2531_v28  ;;  %v2646_v15 = vld [vmem:[%s3712_s0 + $0x14] ss:$28 sps:$4 sm:$0xff]   ;;  %v2607_v20 = vld [vmem:[%s3713_s1 + $0x220] ss:$8 sps:$4 sm:$0xff]   ;;  %v2615_v23 = vld [vmem:[%s3713_s1 + $0x204] ss:$8 sps:$4 sm:$0xff]  }
  0x1d   :  { %738 = vmatprep.subr.bf16.mxu1 %v2535_v29  ;;  %v2606_v17 = vld [vmem:[%s3713_s1 + $0x234] ss:$8 sps:$4 sm:$0xff]   ;;  %v2604_v18 = vld [vmem:[%s3713_s1 + $0x230] ss:$8 sps:$4 sm:$0xff]   ;;  %v2613_v24 = vld [vmem:[%s3713_s1 + $0x200] ss:$8 sps:$4 sm:$0xff]  }
  0x1e   :  { %v2612_v21 = vld [vmem:[%s3713_s1 + $0x214] ss:$8 sps:$4 sm:$0xff]   ;;  %v2610_v22 = vld [vmem:[%s3713_s1 + $0x210] ss:$8 sps:$4 sm:$0xff]   ;;  %v2621_v27 = vld [vmem:[%s3713_s1 + $0x2e4] ss:$8 sps:$4 sm:$0xff]  }
  0x1f   :  { %696 = vmatpush1.bf16.msra.mxu0 %v2534_v30  ;;  %v2618_v25 = vld [vmem:[%s3713_s1 + $0x2f4] ss:$8 sps:$4 sm:$0xff]   ;;  %v2616_v26 = vld [vmem:[%s3713_s1 + $0x2f0] ss:$8 sps:$4 sm:$0xff]   ;;  %v2619_v28 = vld [vmem:[%s3713_s1 + $0x2e0] ss:$8 sps:$4 sm:$0xff]  }
  0x20   :  { %697 = vmatprep.subr.bf16.mxu0 %v2538_v31  ;;  %739 = vmatpush1.bf16.msra.mxu1 %v2537_v32  ;;  %v2624_v29 = vld [vmem:[%s3713_s1 + $0x2d4] ss:$8 sps:$4 sm:$0xff]   ;;  %v2622_v30 = vld [vmem:[%s3713_s1 + $0x2d0] ss:$8 sps:$4 sm:$0xff]   ;;  %v2627_v31 = vld [vmem:[%s3713_s1 + $0x2c4] ss:$8 sps:$4 sm:$0xff]  }
  0x21   :  { %740 = vmatprep.subr.bf16.mxu1 %v2541_v33  ;;  %v2625_v32 = vld [vmem:[%s3713_s1 + $0x2c0] ss:$8 sps:$4 sm:$0xff]   ;;  %v2630_v33 = vld [vmem:[%s3713_s1 + $0x2b4] ss:$8 sps:$4 sm:$0xff]  }
  0x23   :  { %698 = vmatpush2.bf16.msra.mxu0 %v2540_v34  ;;  %v2628_v34 = vld [vmem:[%s3713_s1 + $0x2b0] ss:$8 sps:$4 sm:$0xff]  }
  0x24   :  { %699 = vmatprep.subr.bf16.mxu0 %v2544_v35  ;;  %741 = vmatpush2.bf16.msra.mxu1 %v2543_v36  ;;  %v2633_v35 = vld [vmem:[%s3713_s1 + $0x2a4] ss:$8 sps:$4 sm:$0xff]   ;;  %v2631_v36 = vld [vmem:[%s3713_s1 + $0x2a0] ss:$8 sps:$4 sm:$0xff]  }
  0x25   :  { %742 = vmatprep.subr.bf16.mxu1 %v2547_v37  ;;  %v2636_v37 = vld [vmem:[%s3713_s1 + $0x294] ss:$8 sps:$4 sm:$0xff]  }
  0x27   :  { %700 = vmatpush2.bf16.msra.mxu0 %v2546_v38  ;;  %v2634_v38 = vld [vmem:[%s3713_s1 + $0x290] ss:$8 sps:$4 sm:$0xff]  }
  0x28   :  { %701 = vmatprep.subr.bf16.mxu0 %v2550_v39  ;;  %743 = vmatpush2.bf16.msra.mxu1 %v2549_v40  ;;  %v2642_v39 = vld [vmem:[%s3713_s1 + $0x284] ss:$8 sps:$4 sm:$0xff]   ;;  %v2640_v40 = vld [vmem:[%s3713_s1 + $0x280] ss:$8 sps:$4 sm:$0xff]  }
  0x29   :  { %744 = vmatprep.subr.bf16.mxu1 %v2553_v41  ;;  %v2644_v41 = vld [vmem:[%s3712_s0 + $0x10] ss:$28 sps:$4 sm:$0xff]  }
  0x2b   :  { %702 = vmatpush2.bf16.msra.mxu0 %v2552_v42 }
  0x2c   :  { %703 = vmatprep.subr.bf16.mxu0 %v2556_v43  ;;  %745 = vmatpush2.bf16.msra.mxu1 %v2555_v44 }
  0x2d   :  { %746 = vmatprep.subr.bf16.mxu1 %v2559_v45 }
  0x2f   :  { %704 = vmatpush2.bf16.msra.mxu0 %v2558_v46 }
  0x30   :  { %705 = vmatprep.subr.bf16.mxu0 %v2562_v48  ;;  %747 = vmatpush2.bf16.msra.mxu1 %v2561_v49 }
  0x31   :  { %748 = vmatprep.subr.bf16.mxu1 %v2565_v50 }
  0x33   :  { %706 = vmatpush2.bf16.msra.mxu0 %v2564_v52 }
  0x34   :  { %707 = vmatprep.subr.bf16.mxu0 %v2568_v53  ;;  %749 = vmatpush2.bf16.msra.mxu1 %v2567_v54 }
  0x35   :  { %750 = vmatprep.subr.bf16.mxu1 %v2571_v55 }
  0x37   :  { %708 = vmatpush2.bf16.msra.mxu0 %v2570_v56 }
  0x38   :  { %709 = vmatprep.subr.bf16.mxu0 %v2574_v57  ;;  %751 = vmatpush2.bf16.msra.mxu1 %v2573_v58 }
  0x39   :  { %752 = vmatprep.subr.bf16.mxu1 %v2577_v59 }
  0x3b   :  { %710 = vmatpush2.bf16.msra.mxu0 %v2576_v60 }
  0x3c   :  { %711 = vmatprep.subr.bf16.mxu0 %v2580_v61  ;;  %753 = vmatpush2.bf16.msra.mxu1 %v2579_v62 }
  0x3d   :  { %754 = vmatprep.subr.bf16.mxu1 %v2583_v63 }
  0x3f   :  { %712 = vmatpush2.bf16.msra.mxu0 %v2582_v0 }
  0x40   :  { %767 = vmatprep.subr.bf16.mxu0 %v2591_v1  ;;  %755 = vmatpush2.bf16.msra.mxu1 %v2588_v2 }
  0x41   :  { %824 = vmatprep.subr.bf16.mxu1 %v2639_v8 }
  0x42   :  { %714 = vmatmul.mubr.bf16.vlgmr.msra.gmra.mxu0 %v2585_v3 }
  0x43   :  { %768 = vmatpush1.bf16.msra.mxu0 %v2589_v4  ;;  %757 = vmatmul.mubr.bf16.vlgmr.msra.gmra.mxu1 %v2592_v5 }
  0x44   :  { %769 = vmatprep.subr.bf16.mxu0 %v2597_v6  ;;  %842 = vmatprep.mubr.bf16.mxu1 %v2869_v12 }
  0x45   :  { %825 = vmatpush1.bf16.msra.mxu1 %v2637_v7  ;;  %799 = vmatprep.mubr.bf16.mxu0 %v2646_v15 }
  0x47   :  { %770 = vmatpush1.bf16.msra.mxu0 %v2595_v9 }
  0x48   :  { %771 = vmatprep.subr.bf16.mxu0 %v2600_v10 }
  0x4b   :  { %772 = vmatpush1.bf16.msra.mxu0 %v2598_v11  ;;  %2280 = vmatmul.mubr.msk.bf16.vlgmr.msra.gmra.mxu1 %vm677_vm0, %v2643_v14 }
  0x4c   :  { %773 = vmatprep.subr.bf16.mxu0 %v2603_v13 }
  0x4f   :  { %774 = vmatpush1.bf16.msra.mxu0 %v2601_v16 }
  0x50   :  { %775 = vmatprep.subr.bf16.mxu0 %v2606_v17 }
  0x53   :  { %776 = vmatpush1.bf16.msra.mxu0 %v2604_v18 }
  0x54   :  { %777 = vmatprep.subr.bf16.mxu0 %v2609_v19 }
  0x57   :  { %778 = vmatpush1.bf16.msra.mxu0 %v2607_v20 }
  0x58   :  { %779 = vmatprep.subr.bf16.mxu0 %v2612_v21 }
  0x5b   :  { %780 = vmatpush1.bf16.msra.mxu0 %v2610_v22 }
  0x5c   :  { %781 = vmatprep.subr.bf16.mxu0 %v2615_v23 }
  0x5f   :  { %782 = vmatpush1.bf16.msra.mxu0 %v2613_v24 }
  0x60   :  { %783 = vmatprep.subr.bf16.mxu0 %v2618_v25 }
  0x63   :  { %784 = vmatpush2.bf16.msra.mxu0 %v2616_v26 }
  0x64   :  { %785 = vmatprep.subr.bf16.mxu0 %v2621_v27 }
  0x67   :  { %786 = vmatpush2.bf16.msra.mxu0 %v2619_v28 }
  0x68   :  { %787 = vmatprep.subr.bf16.mxu0 %v2624_v29 }
  0x6b   :  { %788 = vmatpush2.bf16.msra.mxu0 %v2622_v30 }
  0x6c   :  { %789 = vmatprep.subr.bf16.mxu0 %v2627_v31 }
  0x6f   :  { %790 = vmatpush2.bf16.msra.mxu0 %v2625_v32 }
  0x70   :  { %791 = vmatprep.subr.bf16.mxu0 %v2630_v33 }
  0x73   :  { %792 = vmatpush2.bf16.msra.mxu0 %v2628_v34 }
  0x74   :  { %793 = vmatprep.subr.bf16.mxu0 %v2633_v35 }
  0x77   :  { %794 = vmatpush2.bf16.msra.mxu0 %v2631_v36 }
  0x78   :  { %795 = vmatprep.subr.bf16.mxu0 %v2636_v37 }
  0x7b   :  { %796 = vmatpush2.bf16.msra.mxu0 %v2634_v38 }
  0x7c   :  { %797 = vmatprep.subr.bf16.mxu0 %v2642_v39 }
  0x7f   :  { %798 = vmatpush2.bf16.msra.mxu0 %v2640_v40 }
  0x80   :  { %14 = vsyncpa [#allocation3], 0  ;;  %v2647_v42 = vld [vmem:[%s3715_s3 + $0x78] sm:$0xff]   ;;  %v2649_v44 = vld [vmem:[%s3715_s3 + $0x70] sm:$0xff]   ;;  %v142_v59 = vlaneseq  ;;  %vm2153_vm1 = vcmask 125952  }
  0x81   :  { %v2648_v43 = vld [vmem:[%s3715_s3 + $0x38] sm:$0xff]   ;;  %2442 = vmatprep.subr.bf16.mxu1 %v2647_v42  ;;  %v2650_v45 = vld [vmem:[%s3715_s3 + $0x30] sm:$0xff]   ;;  %v2651_v46 = vld [vmem:[%s3715_s3 + $0x68] sm:$0xff]  }
  0x82   :  { %800 = vmatmul.mubr.bf16.vlgmr.msra.gmra.mxu0 %v2644_v41  ;;  %2443 = vmatpush3.bf16.msra.mxu1 %v2648_v43  ;;  %v2652_v47 = vld [vmem:[%s3715_s3 + $0x28] sm:$0xff]   ;;  %v2653_v48 = vld [vmem:[%s3715_s3 + $0x60] sm:$0xff]   ;;  %v2655_v50 = vld [vmem:[%s3715_s3 + $0x58] sm:$0xff]   ;;  %v3290_v61 = vshrl.u32 %v142_v59, 7 }
  0x83   :  { %2444 = vmatprep.subr.bf16.mxu1 %v2649_v44  ;;  %v2654_v49 = vld [vmem:[%s3715_s3 + $0x20] sm:$0xff]   ;;  %v2656_v51 = vld [vmem:[%s3715_s3 + $0x18] sm:$0xff]   ;;  %v2657_v52 = vld [vmem:[%s3715_s3 + $0x50] sm:$0xff]  }
  0x84   :  { %v2658_v53 = vld [vmem:[%s3715_s3 + $0x10] sm:$0xff]   ;;  %v2659_v54 = vld [vmem:[%s3715_s3 + $0x48] sm:$0xff]   ;;  %v2661_v56 = vld [vmem:[%s3715_s3 + $0x40] sm:$0xff]   ;;  %v3293_v0 = vsub.s32 1, %v3290_v61  ;;  %v3299_v2 = vsub.s32 0, %v3290_v61 }
  0x85   :  { %v2660_v55 = vld [vmem:[%s3715_s3 + $0x8] sm:$0xff]   ;;  %v2662_v57 = vld [vmem:[%s3715_s3] sm:$0xff]   ;;  %v2665_v58 = vld [vmem:[%s3717_s5 + $0x74] ss:$8 sps:$4 sm:$0xff]  }
  0x86   :  { %2445 = vmatpush3.bf16.msra.mxu1 %v2650_v45  ;;  %v140_v1 = vld [vmem:[%s3714_s2] sm:$0x3]  ;;  %v2663_v40 = vld [vmem:[%s3717_s5 + $0x70] ss:$8 sps:$4 sm:$0xff]   ;;  %v2668_v42 = vld [vmem:[%s3717_s5 + $0x64] ss:$8 sps:$4 sm:$0xff]  }
  0x87   :  { %2446 = vmatprep.subr.bf16.mxu1 %v2651_v46  ;;  %v149_v5 = vrot.slane %v140_v1, %v3293_v0  ;;  %v145_v6 = vrot.slane %v140_v1, %v3299_v2  ;;  %v2666_v43 = vld [vmem:[%s3717_s5 + $0x60] ss:$8 sps:$4 sm:$0xff]   ;;  %v2671_v44 = vld [vmem:[%s3717_s5 + $0x54] ss:$8 sps:$4 sm:$0xff]   ;;  %v2669_v45 = vld [vmem:[%s3717_s5 + $0x50] ss:$8 sps:$4 sm:$0xff]  }
  0x88   :  { %v2674_v46 = vld [vmem:[%s3717_s5 + $0x44] ss:$8 sps:$4 sm:$0xff]   ;;  %v2705_v1 = vld [vmem:[%s3719_s7 + $0xe0] ss:$28 sps:$4 sm:$0xff]  }
  0x89   :  { %v2693_v59 = vld [vmem:[%s3719_s7 + $0x150] ss:$28 sps:$4 sm:$0xff]  }
  0x8a   :  { %2447 = vmatpush3.bf16.msra.mxu1 %v2652_v47  ;;  %v2677_v47 = vld [vmem:[%s3717_s5 + $0x34] ss:$8 sps:$4 sm:$0xff]  }
  0x8b   :  { %2448 = vmatprep.subr.bf16.mxu1 %v2653_v48  ;;  %v2675_v48 = vld [vmem:[%s3717_s5 + $0x30] ss:$8 sps:$4 sm:$0xff]  }
  0x8e   :  { %2449 = vmatpush3.bf16.msra.mxu1 %v2654_v49  ;;  %v2680_v49 = vld [vmem:[%s3717_s5 + $0x24] ss:$8 sps:$4 sm:$0xff]  }
  0x8f   :  { %2450 = vmatprep.subr.bf16.mxu1 %v2655_v50  ;;  %v2678_v50 = vld [vmem:[%s3717_s5 + $0x20] ss:$8 sps:$4 sm:$0xff]  }
  0x92   :  { %2451 = vmatpush3.bf16.msra.mxu1 %v2656_v51  ;;  %v2683_v51 = vld [vmem:[%s3717_s5 + $0x14] ss:$8 sps:$4 sm:$0xff]  }
  0x93   :  { %2452 = vmatprep.subr.bf16.mxu1 %v2657_v52  ;;  %v2681_v52 = vld [vmem:[%s3717_s5 + $0x10] ss:$8 sps:$4 sm:$0xff]  }
  0x96   :  { %2453 = vmatpush3.bf16.msra.mxu1 %v2658_v53  ;;  %v2686_v53 = vld [vmem:[%s3717_s5 + $0x4] ss:$8 sps:$4 sm:$0xff]  }
  0x97   :  { %2454 = vmatprep.subr.bf16.mxu1 %v2659_v54  ;;  %v2684_v54 = vld [vmem:[%s3717_s5] ss:$8 sps:$4 sm:$0xff]  }
  0x9a   :  { %2455 = vmatpush3.bf16.msra.mxu1 %v2660_v55  ;;  %v2687_v55 = vld [vmem:[%s3719_s7 + $0x188] ss:$28 sps:$4 sm:$0xff]  }
  0x9b   :  { %2456 = vmatprep.subr.bf16.mxu1 %v2661_v56  ;;  %v2689_v56 = vld [vmem:[%s3719_s7 + $0x18c] ss:$28 sps:$4 sm:$0xff]  }
  0x9c   :  { %1936 = vmatprep.subr.bf16.mxu0 %v2689_v56  ;;  %v2764_v56 = vld [vmem:[%s3719_s7 + $0x274] ss:$28 sps:$4 sm:$0xff]  }
  0x9d   :  { %1937 = vmatpush1.bf16.msra.mxu0 %v2687_v55  ;;  %v2756_v55 = vld [vmem:[%s3719_s7 + $0x2a8] ss:$28 sps:$4 sm:$0xff]  }
  0x9e   :  { %2457 = vmatpush3.bf16.msra.mxu1 %v2662_v57  ;;  %v2692_v57 = vld [vmem:[%s3719_s7 + $0x194] ss:$28 sps:$4 sm:$0xff]  }
  0x9f   :  { %1146 = vmatprep.subr.bf16.mxu1 %v2665_v58  ;;  %v2695_v58 = vld [vmem:[%s3719_s7 + $0x154] ss:$28 sps:$4 sm:$0xff]  }
  0xa0   :  { %1938 = vmatprep.subr.bf16.mxu0 %v2695_v58  ;;  %v2767_v58 = vld [vmem:[%s3719_s7 + $0x234] ss:$28 sps:$4 sm:$0xff]  }
  0xa1   :  { %1939 = vmatpush1.bf16.msra.mxu0 %v2693_v59  ;;  %v2770_v59 = vld [vmem:[%s3719_s7 + $0x23c] ss:$28 sps:$4 sm:$0xff]  }
 0x102   :  { %v715_v62 = vpop.f32.mrf.mxu0 }
 0x103   :  { %v758_v60 = vpop.f32.mrf.mxu1  ;;  %v716_v11 = vadd.f32 %v715_v62, %v145_v6  ;;  %v2699_v62 = vld [vmem:[%s3719_s7 + $0x118] ss:$28 sps:$4 sm:$0xff]  }
 0x104   :  { %v717_v3 = vpop.f32.mrf.mxu0 }
 0x105   :  { %v760_v63 = vpop.f32.mrf.mxu1  ;;  %v718_v10 = vadd.f32 %v717_v3, %v149_v5  ;;  %v759_v19 = vadd.f32 %v758_v60, %v716_v11  ;;  %v2701_v60 = vld [vmem:[%s3719_s7 + $0x11c] ss:$28 sps:$4 sm:$0xff]   ;;  %v2713_v3 = vld [vmem:[%s3719_s7 + $0xac] ss:$28 sps:$4 sm:$0xff]  }
 0x106   :  { %v719_v7 = vpop.f32.mrf.mxu0  ;;  %1940 = vmatprep.subr.bf16.mxu0 %v2701_v60  ;;  %v2737_v11 = vld [vmem:[%s3719_s7 + $0x34c] ss:$28 sps:$4 sm:$0xff]  }
 0x107   :  { %v762_v4 = vpop.f32.mrf.mxu1  ;;  %v720_v14 = vadd.f32 %v719_v7, %v145_v6  ;;  %v761_v17 = vadd.f32 %v760_v63, %v718_v10  ;;  %v2707_v63 = vld [vmem:[%s3719_s7 + $0xe4] ss:$28 sps:$4 sm:$0xff]   ;;  %1941 = vmatpush1.bf16.msra.mxu0 %v2699_v62  ;;  %v2717_v6 = vld [vmem:[%s3719_s7 + $0x70] ss:$28 sps:$4 sm:$0xff]   ;;  %v2725_v7 = vld [vmem:[%s3719_s7 + $0x3c] ss:$28 sps:$4 sm:$0xff]  }
 0x108   :  { %v721_v13 = vpop.f32.mrf.mxu0  ;;  %1942 = vmatprep.subr.bf16.mxu0 %v2707_v63  ;;  %v2729_v10 = vld [vmem:[%s3719_s7] ss:$28 sps:$4 sm:$0xff]   ;;  %v2765_v60 = vld [vmem:[%s3719_s7 + $0x230] ss:$28 sps:$4 sm:$0xff]   ;;  %v2768_v62 = vld [vmem:[%s3719_s7 + $0x238] ss:$28 sps:$4 sm:$0xff]  }
 0x109   :  { %v764_v8 = vpop.f32.mrf.mxu1  ;;  %v722_v18 = vadd.f32 %v721_v13, %v149_v5  ;;  %v763_v21 = vadd.f32 %v762_v4, %v720_v14  ;;  %v2711_v4 = vld [vmem:[%s3719_s7 + $0xa8] ss:$28 sps:$4 sm:$0xff]   ;;  %v2719_v5 = vld [vmem:[%s3719_s7 + $0x74] ss:$28 sps:$4 sm:$0xff]   ;;  %v2773_v63 = vld [vmem:[%s3719_s7 + $0x1fc] ss:$28 sps:$4 sm:$0xff]  }
 0x10a   :  { %v2735_v13 = vld [vmem:[%s3719_s7 + $0x348] ss:$28 sps:$4 sm:$0xff]   ;;  %v2743_v14 = vld [vmem:[%s3719_s7 + $0x314] ss:$28 sps:$4 sm:$0xff]  }
 0x10b   :  { %v844_v9 = vpop.f32.mrf.mxu1  ;;  %v765_v26 = vadd.f32 %v764_v8, %v722_v18  ;;  %1943 = vmatpush1.bf16.msra.mxu0 %v2705_v1  ;;  %v2723_v8 = vld [vmem:[%s3719_s7 + $0x38] ss:$28 sps:$4 sm:$0xff]   ;;  %v2755_v18 = vld [vmem:[%s3719_s7 + $0x2a4] ss:$28 sps:$4 sm:$0xff]  }
 0x10c   :  { %1944 = vmatprep.subr.bf16.mxu0 %v2713_v3  ;;  %v2776_v1 = vld [vmem:[%s3719_s7 + $0x204] ss:$28 sps:$4 sm:$0xff]   ;;  %v2771_v3 = vld [vmem:[%s3719_s7 + $0x1f8] ss:$28 sps:$4 sm:$0xff]  }
 0x10d   :  { %v846_v15 = vpop.f32.mrf.mxu1 }
 0x10f   :  { %v848_v24 = vpop.f32.mrf.mxu1  ;;  %1945 = vmatpush1.bf16.msra.mxu0 %v2711_v4  ;;  %v2774_v4 = vld [vmem:[%s3719_s7 + $0x200] ss:$28 sps:$4 sm:$0xff]  }
 0x110   :  { %1946 = vmatprep.subr.bf16.mxu0 %v2719_v5  ;;  %v2779_v5 = vld [vmem:[%s3719_s7 + $0x1c4] ss:$28 sps:$4 sm:$0xff]  }
 0x111   :  { %v850_v33 = vpop.f32.mrf.mxu1 }
 0x113   :  { %1947 = vmatpush1.bf16.msra.mxu0 %v2717_v6  ;;  %v2782_v6 = vld [vmem:[%s3719_s7 + $0x1cc] ss:$28 sps:$4 sm:$0xff]  }
 0x114   :  { %1948 = vmatprep.subr.bf16.mxu0 %v2725_v7  ;;  %v2777_v7 = vld [vmem:[%s3719_s7 + $0x1c0] ss:$28 sps:$4 sm:$0xff]  }
 0x117   :  { %1949 = vmatpush1.bf16.msra.mxu0 %v2723_v8  ;;  %v2780_v8 = vld [vmem:[%s3719_s7 + $0x1c8] ss:$28 sps:$4 sm:$0xff]  }
 0x142   :  { %v801_v16 = vpop.f32.mrf.mxu0 }
 0x143   :  { %v802_v23 = vadd.f32 %v801_v16, %v759_v19  ;;  %v2749_v16 = vld [vmem:[%s3719_s7 + $0x2dc] ss:$28 sps:$4 sm:$0xff]  }
 0x144   :  { %v803_v20 = vpop.f32.mrf.mxu0  ;;  %v2753_v19 = vld [vmem:[%s3719_s7 + $0x2a0] ss:$28 sps:$4 sm:$0xff]  }
 0x145   :  { %v804_v22 = vadd.f32 %v803_v20, %v761_v17  ;;  %v845_v32 = vadd.f32 %v844_v9, %v802_v23  ;;  %v2731_v9 = vld [vmem:[%s3719_s7 + $0x4] ss:$28 sps:$4 sm:$0xff]   ;;  %v2747_v17 = vld [vmem:[%s3719_s7 + $0x2d8] ss:$28 sps:$4 sm:$0xff]   ;;  %v2761_v20 = vld [vmem:[%s3719_s7 + $0x26c] ss:$28 sps:$4 sm:$0xff]  }
 0x146   :  { %v805_v25 = vpop.f32.mrf.mxu0  ;;  %1950 = vmatprep.subr.bf16.mxu0 %v2731_v9  ;;  %v2785_v9 = vld [vmem:[%s3719_s7 + $0x19c] ss:$28 sps:$4 sm:$0xff]  }
 0x147   :  { %v806_v27 = vadd.f32 %v805_v25, %v763_v21  ;;  %v847_v29 = vadd.f32 %v846_v15, %v804_v22  ;;  %v853_v38 = vmax.f32 %v845_v32, 0.0  ;;  %1951 = vmatpush1.bf16.msra.mxu0 %v2729_v10  ;;  %v2741_v15 = vld [vmem:[%s3719_s7 + $0x310] ss:$28 sps:$4 sm:$0xff]   ;;  %v2759_v21 = vld [vmem:[%s3719_s7 + $0x268] ss:$28 sps:$4 sm:$0xff]  }
 0x148   :  { %v807_v28 = vpop.f32.mrf.mxu0  ;;  %1952 = vmatprep.subr.bf16.mxu0 %v2737_v11  ;;  %v2281_v25 = vld [vmem:[%s3716_s4] ss:$0 sm:$0xff] }
 0x149   :  { %v849_v30 = vadd.f32 %v848_v24, %v806_v27  ;;  %v808_v31 = vadd.f32 %v807_v28, %v765_v26  ;;  %v854_v36 = vmax.f32 %v847_v29, 0.0  ;;  %v2786_v10 = vld [vmem:[%s3719_s7 + $0x360] ss:$28 sps:$4 sm:$0xff]  }
 0x14a   :  { %v1054_v11 = vld [vmem:[%s3718_s6] sm:$0x3] }
 0x14b   :  { %v851_v34 = vadd.f32 %v850_v33, %v808_v31  ;;  %v855_v35 = vmax.f32 %v849_v30, 0.0  ;;  %1953 = vmatpush2.bf16.msra.mxu0 %v2735_v13  ;;  %v2690_v33 = vld [vmem:[%s3719_s7 + $0x190] ss:$28 sps:$4 sm:$0xff]  }
 0x14c   :  { %1954 = vmatprep.subr.bf16.mxu0 %v2743_v14  ;;  %v1063_v14 = vrot.slane %v1054_v11, %v3293_v0 }
 0x14d   :  { %v856_v37 = vmax.f32 %v851_v34, 0.0  ;;  %v857_v41 = vpack.c.bf16 %v855_v35, %v853_v38  ;;  %v2698_v35 = vld [vmem:[%s3719_s7 + $0x15c] ss:$28 sps:$4 sm:$0xff]  }
 0x14e   :  { %v2702_v38 = vld [vmem:[%s3719_s7 + $0x120] ss:$28 sps:$4 sm:$0xff]  }
 0x14f   :  { %v858_v39 = vpack.c.bf16 %v856_v37, %v854_v36  ;;  %1955 = vmatpush2.bf16.msra.mxu0 %v2741_v15  ;;  %v2696_v36 = vld [vmem:[%s3719_s7 + $0x158] ss:$28 sps:$4 sm:$0xff]   ;;  %v2704_v37 = vld [vmem:[%s3719_s7 + $0x124] ss:$28 sps:$4 sm:$0xff]   ;;  %v1059_v15 = vrot.slane %v1054_v11, %v3299_v2 }
 0x150   :  { %1956 = vmatprep.subr.bf16.mxu0 %v2749_v16  ;;  %v2846_v11 = vld [vmem:[%s3719_s7 + $0x1d4] ss:$28 sps:$4 sm:$0xff]  }
 0x151   :  { %1026 = vmatprep.mubr.bf16.mxu1 %v858_v39  ;;  %v2710_v39 = vld [vmem:[%s3719_s7 + $0xec] ss:$28 sps:$4 sm:$0xff]  }
 0x152   :  { %1027 = vmatmul.mubr.bf16.vlgmr.msra.gmra.mxu1 %v857_v41  ;;  %v2716_v41 = vld [vmem:[%s3719_s7 + $0xb4] ss:$28 sps:$4 sm:$0xff]  }
 0x153   :  { %1147 = vmatpush1.bf16.msra.mxu1 %v2663_v40  ;;  %1178 = vmatprep.mubr.bf16.mxu1 %v2869_v12  ;;  %v2672_v12 = vld [vmem:[%s3717_s5 + $0x40] ss:$8 sps:$4 sm:$0xff]  }
 0x154   :  { %1148 = vmatprep.subr.bf16.mxu1 %v2668_v42  ;;  %1957 = vmatpush2.bf16.msra.mxu0 %v2747_v17  ;;  %v2708_v40 = vld [vmem:[%s3719_s7 + $0xe8] ss:$28 sps:$4 sm:$0xff]   ;;  %v2714_v42 = vld [vmem:[%s3719_s7 + $0xb0] ss:$28 sps:$4 sm:$0xff]  }
 0x155   :  { %1958 = vmatprep.subr.bf16.mxu0 %v2755_v18 }
 0x157   :  { %1149 = vmatpush1.bf16.msra.mxu1 %v2666_v43  ;;  %v2722_v43 = vld [vmem:[%s3719_s7 + $0x7c] ss:$28 sps:$4 sm:$0xff]  }
 0x158   :  { %1150 = vmatprep.subr.bf16.mxu1 %v2671_v44  ;;  %1959 = vmatpush2.bf16.msra.mxu0 %v2753_v19  ;;  %v2720_v44 = vld [vmem:[%s3719_s7 + $0x78] ss:$28 sps:$4 sm:$0xff]  }
 0x159   :  { %1960 = vmatprep.subr.bf16.mxu0 %v2761_v20 }
 0x15b   :  { %1151 = vmatpush1.bf16.msra.mxu1 %v2669_v45  ;;  %v2728_v45 = vld [vmem:[%s3719_s7 + $0x44] ss:$28 sps:$4 sm:$0xff]  }
 0x15c   :  { %1152 = vmatprep.subr.bf16.mxu1 %v2674_v46  ;;  %1961 = vmatpush2.bf16.msra.mxu0 %v2759_v21  ;;  %v2726_v46 = vld [vmem:[%s3719_s7 + $0x40] ss:$28 sps:$4 sm:$0xff]  }
 0x15d   :  { %1962 = vmatprep.subr.bf16.mxu0 %v2767_v58  ;;  %v2825_v58 = vld [vmem:[%s3719_s7 + $0x35c] ss:$28 sps:$4 sm:$0xff]  }
 0x15f   :  { %1153 = vmatpush1.bf16.msra.mxu1 %v2672_v12  ;;  %v2734_v12 = vld [vmem:[%s3719_s7 + $0xc] ss:$28 sps:$4 sm:$0xff]  }
 0x160   :  { %1154 = vmatprep.subr.bf16.mxu1 %v2677_v47  ;;  %v2732_v47 = vld [vmem:[%s3719_s7 + $0x8] ss:$28 sps:$4 sm:$0xff]   ;;  %1963 = vmatpush2.bf16.msra.mxu0 %v2765_v60 }
 0x161   :  { %1964 = vmatprep.subr.bf16.mxu0 %v2773_v63  ;;  %v2828_v60 = vld [vmem:[%s3719_s7 + $0x324] ss:$28 sps:$4 sm:$0xff]   ;;  %v2831_v63 = vld [vmem:[%s3719_s7 + $0x2ec] ss:$28 sps:$4 sm:$0xff]  }
 0x163   :  { %1155 = vmatpush1.bf16.msra.mxu1 %v2675_v48  ;;  %v2740_v48 = vld [vmem:[%s3719_s7 + $0x354] ss:$28 sps:$4 sm:$0xff]  }
 0x164   :  { %1156 = vmatprep.subr.bf16.mxu1 %v2680_v49  ;;  %v2738_v49 = vld [vmem:[%s3719_s7 + $0x350] ss:$28 sps:$4 sm:$0xff]   ;;  %1965 = vmatpush2.bf16.msra.mxu0 %v2771_v3 }
 0x165   :  { %1966 = vmatprep.subr.bf16.mxu0 %v2779_v5  ;;  %v2834_v3 = vld [vmem:[%s3719_s7 + $0x2b4] ss:$28 sps:$4 sm:$0xff]   ;;  %v2837_v5 = vld [vmem:[%s3719_s7 + $0x27c] ss:$28 sps:$4 sm:$0xff]  }
 0x167   :  { %1157 = vmatpush1.bf16.msra.mxu1 %v2678_v50  ;;  %v2746_v50 = vld [vmem:[%s3719_s7 + $0x31c] ss:$28 sps:$4 sm:$0xff]  }
 0x168   :  { %1158 = vmatprep.subr.bf16.mxu1 %v2683_v51  ;;  %v2744_v51 = vld [vmem:[%s3719_s7 + $0x318] ss:$28 sps:$4 sm:$0xff]   ;;  %1967 = vmatpush2.bf16.msra.mxu0 %v2777_v7  ;;  %v2840_v7 = vld [vmem:[%s3719_s7 + $0x244] ss:$28 sps:$4 sm:$0xff]  }
 0x169   :  { %2022 = vmatprep.subr.bf16.mxu0 %v2785_v9  ;;  %v2843_v9 = vld [vmem:[%s3719_s7 + $0x20c] ss:$28 sps:$4 sm:$0xff]  }
 0x16b   :  { %1159 = vmatpush1.bf16.msra.mxu1 %v2681_v52  ;;  %v2752_v52 = vld [vmem:[%s3719_s7 + $0x2e4] ss:$28 sps:$4 sm:$0xff]  }
 0x16c   :  { %1160 = vmatprep.subr.bf16.mxu1 %v2686_v53  ;;  %v2750_v53 = vld [vmem:[%s3719_s7 + $0x2e0] ss:$28 sps:$4 sm:$0xff]  }
 0x16f   :  { %1161 = vmatpush1.bf16.msra.mxu1 %v2684_v54  ;;  %v2758_v54 = vld [vmem:[%s3719_s7 + $0x2ac] ss:$28 sps:$4 sm:$0xff]  }
 0x170   :  { %1979 = vmatprep.subr.bf16.mxu1 %v2692_v57  ;;  %v2762_v57 = vld [vmem:[%s3719_s7 + $0x270] ss:$28 sps:$4 sm:$0xff]  }
 0x212   :  { %v2458_v22 = vpop.f32.mrf.mxu1 }
 0x214   :  { %v2459_v23 = vpop.f32.mrf.mxu1 }
 0x215   :  { %v2460_v24 = vadd.f32 %v2459_v23, %v2458_v22 }
 0x216   :  { %v2461_v26 = vpop.f32.mrf.mxu1 }
 0x217   :  { %v1029_v28 = vadd.f32 %v2460_v24, %v2281_v25 }
 0x218   :  { %v2462_v27 = vpop.f32.mrf.mxu1 }
 0x219   :  { %v2463_v29 = vadd.f32 %v2462_v27, %v2461_v26  ;;  %v1035_v31 = vmax.f32 %v1029_v28, 0.0  ;;  %v2783_v28 = vld [vmem:[%s3719_s7 + $0x198] ss:$28 sps:$4 sm:$0xff]  }
 0x21b   :  { %v1032_v30 = vadd.f32 %v2463_v29, %v2281_v25  ;;  %v2787_v29 = vld [vmem:[%s3719_s7 + $0x1a0] ss:$28 sps:$4 sm:$0xff]  }
 0x21d   :  { %v1036_v32 = vmax.f32 %v1032_v30, 0.0 }
 0x21f   :  { %v1037_v34 = vpack.c.bf16 %v1036_v32, %v1035_v31  ;;  %v2790_v31 = vld [vmem:[%s3719_s7 + $0x164] ss:$28 sps:$4 sm:$0xff]  }
 0x220   :  { %v2791_v32 = vld [vmem:[%s3719_s7 + $0x328] ss:$28 sps:$4 sm:$0xff]  }
 0x221   :  { %1179 = vmatmul.mubr.bf16.vlgmr.msra.gmra.mxu1 %v1037_v34  ;;  %v2792_v34 = vld [vmem:[%s3719_s7 + $0x168] ss:$28 sps:$4 sm:$0xff]  }
 0x222   :  { %1980 = vmatpush1.bf16.msra.mxu1 %v2690_v33  ;;  %v2788_v33 = vld [vmem:[%s3719_s7 + $0x160] ss:$28 sps:$4 sm:$0xff]  }
 0x223   :  { %1981 = vmatprep.subr.bf16.mxu1 %v2698_v35  ;;  %v2795_v35 = vld [vmem:[%s3719_s7 + $0x12c] ss:$28 sps:$4 sm:$0xff]  }
 0x226   :  { %1982 = vmatpush1.bf16.msra.mxu1 %v2696_v36  ;;  %v2796_v36 = vld [vmem:[%s3719_s7 + $0x2f0] ss:$28 sps:$4 sm:$0xff]  }
 0x227   :  { %1983 = vmatprep.subr.bf16.mxu1 %v2704_v37  ;;  %v2793_v37 = vld [vmem:[%s3719_s7 + $0x128] ss:$28 sps:$4 sm:$0xff]  }
 0x22a   :  { %1984 = vmatpush1.bf16.msra.mxu1 %v2702_v38  ;;  %v2797_v38 = vld [vmem:[%s3719_s7 + $0x130] ss:$28 sps:$4 sm:$0xff]  }
 0x22b   :  { %1985 = vmatprep.subr.bf16.mxu1 %v2710_v39  ;;  %v2800_v39 = vld [vmem:[%s3719_s7 + $0xf4] ss:$28 sps:$4 sm:$0xff]  }
 0x22e   :  { %1986 = vmatpush1.bf16.msra.mxu1 %v2708_v40  ;;  %v2801_v40 = vld [vmem:[%s3719_s7 + $0x2b8] ss:$28 sps:$4 sm:$0xff]  }
 0x22f   :  { %1987 = vmatprep.subr.bf16.mxu1 %v2716_v41  ;;  %v2798_v41 = vld [vmem:[%s3719_s7 + $0xf0] ss:$28 sps:$4 sm:$0xff]  }
 0x232   :  { %1988 = vmatpush1.bf16.msra.mxu1 %v2714_v42  ;;  %v2802_v42 = vld [vmem:[%s3719_s7 + $0xf8] ss:$28 sps:$4 sm:$0xff]  }
 0x233   :  { %1989 = vmatprep.subr.bf16.mxu1 %v2722_v43  ;;  %v2805_v43 = vld [vmem:[%s3719_s7 + $0xbc] ss:$28 sps:$4 sm:$0xff]  }
 0x236   :  { %1990 = vmatpush1.bf16.msra.mxu1 %v2720_v44  ;;  %v2806_v44 = vld [vmem:[%s3719_s7 + $0x280] ss:$28 sps:$4 sm:$0xff]  }
 0x237   :  { %1991 = vmatprep.subr.bf16.mxu1 %v2728_v45  ;;  %v2803_v45 = vld [vmem:[%s3719_s7 + $0xb8] ss:$28 sps:$4 sm:$0xff]  }
 0x23a   :  { %1992 = vmatpush1.bf16.msra.mxu1 %v2726_v46  ;;  %v2807_v46 = vld [vmem:[%s3719_s7 + $0xc0] ss:$28 sps:$4 sm:$0xff]  }
 0x23b   :  { %1993 = vmatprep.subr.bf16.mxu1 %v2734_v12  ;;  %v2810_v12 = vld [vmem:[%s3719_s7 + $0x84] ss:$28 sps:$4 sm:$0xff]  }
 0x23e   :  { %1994 = vmatpush1.bf16.msra.mxu1 %v2732_v47  ;;  %v2811_v47 = vld [vmem:[%s3719_s7 + $0x248] ss:$28 sps:$4 sm:$0xff]  }
 0x23f   :  { %1995 = vmatprep.subr.bf16.mxu1 %v2740_v48  ;;  %v2808_v48 = vld [vmem:[%s3719_s7 + $0x80] ss:$28 sps:$4 sm:$0xff]  }
 0x242   :  { %1996 = vmatpush2.bf16.msra.mxu1 %v2738_v49  ;;  %v2812_v49 = vld [vmem:[%s3719_s7 + $0x88] ss:$28 sps:$4 sm:$0xff]  }
 0x243   :  { %1997 = vmatprep.subr.bf16.mxu1 %v2746_v50  ;;  %v2815_v50 = vld [vmem:[%s3719_s7 + $0x4c] ss:$28 sps:$4 sm:$0xff]  }
 0x246   :  { %1998 = vmatpush2.bf16.msra.mxu1 %v2744_v51  ;;  %v2816_v51 = vld [vmem:[%s3719_s7 + $0x210] ss:$28 sps:$4 sm:$0xff]  }
 0x247   :  { %1999 = vmatprep.subr.bf16.mxu1 %v2752_v52  ;;  %v2813_v52 = vld [vmem:[%s3719_s7 + $0x48] ss:$28 sps:$4 sm:$0xff]  }
 0x24a   :  { %2000 = vmatpush2.bf16.msra.mxu1 %v2750_v53  ;;  %v2817_v53 = vld [vmem:[%s3719_s7 + $0x50] ss:$28 sps:$4 sm:$0xff]  }
 0x24b   :  { %2001 = vmatprep.subr.bf16.mxu1 %v2758_v54  ;;  %v2820_v54 = vld [vmem:[%s3719_s7 + $0x14] ss:$28 sps:$4 sm:$0xff]  }
 0x24e   :  { %2002 = vmatpush2.bf16.msra.mxu1 %v2756_v55  ;;  %v2821_v55 = vld [vmem:[%s3719_s7 + $0x1d8] ss:$28 sps:$4 sm:$0xff]  }
 0x24f   :  { %2003 = vmatprep.subr.bf16.mxu1 %v2764_v56  ;;  %v2818_v56 = vld [vmem:[%s3719_s7 + $0x10] ss:$28 sps:$4 sm:$0xff]  }
 0x252   :  { %2004 = vmatpush2.bf16.msra.mxu1 %v2762_v57  ;;  %v2822_v57 = vld [vmem:[%s3719_s7 + $0x18] ss:$28 sps:$4 sm:$0xff]  }
 0x253   :  { %2005 = vmatprep.subr.bf16.mxu1 %v2770_v59  ;;  %v2823_v59 = vld [vmem:[%s3719_s7 + $0x358] ss:$28 sps:$4 sm:$0xff]  }
 0x256   :  { %2006 = vmatpush2.bf16.msra.mxu1 %v2768_v62  ;;  %v2826_v62 = vld [vmem:[%s3719_s7 + $0x320] ss:$28 sps:$4 sm:$0xff]  }
 0x257   :  { %2007 = vmatprep.subr.bf16.mxu1 %v2776_v1  ;;  %v2829_v1 = vld [vmem:[%s3719_s7 + $0x2e8] ss:$28 sps:$4 sm:$0xff]  }
 0x25a   :  { %2008 = vmatpush2.bf16.msra.mxu1 %v2774_v4  ;;  %v2832_v4 = vld [vmem:[%s3719_s7 + $0x2b0] ss:$28 sps:$4 sm:$0xff]  }
 0x25b   :  { %2009 = vmatprep.subr.bf16.mxu1 %v2782_v6  ;;  %v2835_v6 = vld [vmem:[%s3719_s7 + $0x278] ss:$28 sps:$4 sm:$0xff]  }
 0x25e   :  { %2010 = vmatpush2.bf16.msra.mxu1 %v2780_v8  ;;  %v2838_v8 = vld [vmem:[%s3719_s7 + $0x240] ss:$28 sps:$4 sm:$0xff]  }
 0x25f   :  { %2464 = vmatprep.subr.bf16.mxu1 %v2786_v10  ;;  %v2841_v10 = vld [vmem:[%s3719_s7 + $0x208] ss:$28 sps:$4 sm:$0xff]  }
 0x2e1   :  { %v1180_v13 = vpop.f32.mrf.mxu1 }
 0x2e2   :  { %v1181_v20 = vadd.f32 %v1180_v13, %v1059_v15  ;;  %v2844_v13 = vld [vmem:[%s3719_s7 + $0x1d0] ss:$28 sps:$4 sm:$0xff]   ;;  %s2870_s7 = smov [#allocation2]  }
 0x2e3   :  { %v1182_v16 = vpop.f32.mrf.mxu1 }
 0x2e4   :  { %v1183_v18 = vadd.f32 %v1182_v16, %v1063_v14  ;;  %v1189_v26 = vmax.f32 %v1181_v20, 0.0  ;;  %v1323_v16 = vld [vmem:[%s3720_s8] sm:$0x7f]  ;;  %s2164_s8 = sshll.u32 %s2870_s7, 4  ;;  %s2165_s8 = int_to_ptr.vmem [resolvable:$true] %s2164_s8 }
 0x2e5   :  { %v1184_v17 = vpop.f32.mrf.mxu1  ;;  %s2847_s12 = scalar_lea.vmem %s2165_s8, 896  ;;  %p2852_p1 = scmp.lt.s32.totalorder %s2165_s8, %s2165_s8 }
 0x2e6   :  { %v1185_v19 = vadd.f32 %v1184_v17, %v1059_v15  ;;  %v1190_v24 = vmax.f32 %v1183_v18, 0.0  ;;  %v1339_v15 = vsub.s32 3, %v3290_v61  ;;  %v1328_v17 = vrot.slane %v1323_v16, %v3299_v2  ;;  %p2848_p0 = scmp.ne.s32.totalorder %s2165_s8, %s2847_s12  ;;  %p2853_p2 = scmp.lt.s32.totalorder %s2847_s12, %s2847_s12 }
 0x2e7   :  { %v1186_v21 = vpop.f32.mrf.mxu1 }
 0x2e8   :  { %v1187_v22 = vadd.f32 %v1186_v21, %v1063_v14  ;;  %v1191_v23 = vmax.f32 %v1185_v19, 0.0  ;;  %v1335_v14 = vsub.s32 2, %v3290_v61  ;;  %v1332_v19 = vrot.slane %v1323_v16, %v3293_v0  ;;  %p2854_p3 = por %p2853_p2, %p2852_p1 }
 0x2e9   :  { %v1340_v20 = vrot.slane %v1323_v16, %v1339_v15 }
 0x2ea   :  { %v1192_v25 = vmax.f32 %v1187_v22, 0.0  ;;  %v3561_v30 = vpack.c.bf16 %v1191_v23, %v1189_v26  ;;  %v1336_v18 = vrot.slane %v1323_v16, %v1335_v14  ;;  %p2855_p4 = pnand %p2854_p3, %p2848_p0 }
 0x2ec   :  { %v1194_v27 = vpack.c.bf16 %v1192_v25, %v1190_v24 }
 0x2ee   :  { %1968 = vmatprep.mubr.bf16.mxu0 %v1194_v27  ;;  %2011 = vmatprep.mubr.bf16.mxu1 %v1194_v27 }
 0x2ef   :  { %1969 = vmatmul.mubr.bf16.vlgmr.msra.gmra.mxu0 %v3561_v30  ;;  %2012 = vmatmul.mubr.bf16.vlgmr.msra.gmra.mxu1 %v3561_v30 }
 0x2f0   :  { %2023 = vmatpush1.bf16.msra.mxu0 %v2783_v28  ;;  %2465 = vmatpush3.bf16.msra.mxu1 %v2787_v29 }
 0x2f1   :  { %2054 = vmatprep.mubr.bf16.mxu0 %v1194_v27  ;;  %2097 = vmatprep.mubr.bf16.mxu1 %v1194_v27 }
 0x2f2   :  { %2024 = vmatprep.subr.bf16.mxu0 %v2790_v31  ;;  %2466 = vmatprep.subr.bf16.mxu1 %v2791_v32 }
 0x2f4   :  { %2025 = vmatpush1.bf16.msra.mxu0 %v2788_v33  ;;  %2467 = vmatpush3.bf16.msra.mxu1 %v2792_v34 }
 0x2f5   :  { %2026 = vmatprep.subr.bf16.mxu0 %v2795_v35  ;;  %2468 = vmatprep.subr.bf16.mxu1 %v2796_v36 }
 0x2f8   :  { %2027 = vmatpush1.bf16.msra.mxu0 %v2793_v37  ;;  %2469 = vmatpush3.bf16.msra.mxu1 %v2797_v38 }
 0x2f9   :  { %2028 = vmatprep.subr.bf16.mxu0 %v2800_v39  ;;  %2470 = vmatprep.subr.bf16.mxu1 %v2801_v40  ;;  %v1351_v39 = vsub.s32 6, %v3290_v61 }
 0x2fc   :  { %2029 = vmatpush1.bf16.msra.mxu0 %v2798_v41  ;;  %2471 = vmatpush3.bf16.msra.mxu1 %v2802_v42  ;;  %v1352_v41 = vrot.slane %v1323_v16, %v1351_v39 }
 0x2fd   :  { %2030 = vmatprep.subr.bf16.mxu0 %v2805_v43  ;;  %2472 = vmatprep.subr.bf16.mxu1 %v2806_v44 }
 0x300   :  { %2031 = vmatpush1.bf16.msra.mxu0 %v2803_v45  ;;  %2473 = vmatpush3.bf16.msra.mxu1 %v2807_v46 }
 0x301   :  { %2032 = vmatprep.subr.bf16.mxu0 %v2810_v12  ;;  %2474 = vmatprep.subr.bf16.mxu1 %v2811_v47 }
 0x304   :  { %2033 = vmatpush1.bf16.msra.mxu0 %v2808_v48  ;;  %2475 = vmatpush3.bf16.msra.mxu1 %v2812_v49 }
 0x305   :  { %2034 = vmatprep.subr.bf16.mxu0 %v2815_v50  ;;  %2476 = vmatprep.subr.bf16.mxu1 %v2816_v51  ;;  %v1343_v50 = vsub.s32 4, %v3290_v61  ;;  %v1347_v51 = vsub.s32 5, %v3290_v61 }
 0x308   :  { %2035 = vmatpush1.bf16.msra.mxu0 %v2813_v52  ;;  %2477 = vmatpush3.bf16.msra.mxu1 %v2817_v53  ;;  %v1344_v52 = vrot.slane %v1323_v16, %v1343_v50  ;;  %v1348_v53 = vrot.slane %v1323_v16, %v1347_v51 }
 0x309   :  { %2036 = vmatprep.subr.bf16.mxu0 %v2820_v54  ;;  %2478 = vmatprep.subr.bf16.mxu1 %v2821_v55 }
 0x30c   :  { %2037 = vmatpush1.bf16.msra.mxu0 %v2818_v56  ;;  %2479 = vmatpush3.bf16.msra.mxu1 %v2822_v57 }
 0x30d   :  { %2038 = vmatprep.subr.bf16.mxu0 %v2825_v58 }
 0x30f   :  { %2098 = vmatmul.mubr.bf16.vlgmr.msra.gmra.mxu1 %v3561_v30 }
 0x310   :  { %2039 = vmatpush2.bf16.msra.mxu0 %v2823_v59 }
 0x311   :  { %2040 = vmatprep.subr.bf16.mxu0 %v2828_v60 }
 0x314   :  { %2041 = vmatpush2.bf16.msra.mxu0 %v2826_v62 }
 0x315   :  { %2042 = vmatprep.subr.bf16.mxu0 %v2831_v63 }
 0x318   :  { %2043 = vmatpush2.bf16.msra.mxu0 %v2829_v1 }
 0x319   :  { %2044 = vmatprep.subr.bf16.mxu0 %v2834_v3 }
 0x31c   :  { %2045 = vmatpush2.bf16.msra.mxu0 %v2832_v4 }
 0x31d   :  { %2046 = vmatprep.subr.bf16.mxu0 %v2837_v5 }
 0x320   :  { %2047 = vmatpush2.bf16.msra.mxu0 %v2835_v6 }
 0x321   :  { %2048 = vmatprep.subr.bf16.mxu0 %v2840_v7 }
 0x324   :  { %2049 = vmatpush2.bf16.msra.mxu0 %v2838_v8 }
 0x325   :  { %2050 = vmatprep.subr.bf16.mxu0 %v2843_v9 }
 0x328   :  { %2051 = vmatpush2.bf16.msra.mxu0 %v2841_v10 }
 0x329   :  { %2052 = vmatprep.subr.bf16.mxu0 %v2846_v11 }
 0x32c   :  { %2053 = vmatpush2.bf16.msra.mxu0 %v2844_v13 }
 0x32f   :  { %2055 = vmatmul.mubr.bf16.vlgmr.msra.gmra.mxu0 %v3561_v30 }
 0x3af   :  { %v1970_v21 = vpop.f32.mrf.mxu0  ;;  %v2013_v22 = vpop.f32.mrf.mxu1 }
 0x3b0   :  { %v1971_v25 = vadd.f32 %v1970_v21, %v1328_v17  ;;  %v2014_v26 = vadd.f32 %v2013_v22, %v1336_v18 }
 0x3b1   :  { %v1972_v23 = vpop.f32.mrf.mxu0  ;;  %v2015_v24 = vpop.f32.mrf.mxu1 }
 0x3b2   :  { %v1973_v27 = vadd.f32 %v1972_v23, %v1332_v19  ;;  %v2016_v28 = vadd.f32 %v2015_v24, %v1340_v20 }
 0x3b3   :  { %v1974_v29 = vpop.f32.mrf.mxu0  ;;  %v2017_v30 = vpop.f32.mrf.mxu1 }
 0x3b4   :  { %v2434_v31 = vpack.c.bf16 %v1973_v27, %v1971_v25  ;;  %v2435_v32 = vpack.c.bf16 %v2016_v28, %v2014_v26  ;;  %v1975_v2 = vadd.f32 %v1974_v29, %v1328_v17  ;;  %v2018_v35 = vadd.f32 %v2017_v30, %v1336_v18 }
 0x3b5   :  { %v1976_v33 = vpop.f32.mrf.mxu0  ;;  %v2019_v34 = vpop.f32.mrf.mxu1 }
 0x3b6   :  { %2150 = vst [vmem:[#allocation2] sm:$0xff] %v2434_v31  ;;  %2151 = vst [vmem:[#allocation2 + $0x8] sm:$0xff] %v2435_v32  ;;  %v1977_v0 = vadd.f32 %v1976_v33, %v1332_v19  ;;  %v2020_v36 = vadd.f32 %v2019_v34, %v1340_v20 }
 0x3b8   :  { %v2438_v37 = vpack.c.bf16 %v1977_v0, %v1975_v2  ;;  %v2439_v38 = vpack.c.bf16 %v2020_v36, %v2018_v35 }
 0x3ba   :  { %2155 = vst [vmem:[#allocation2 + $0x1c] sm:$0xff] %v2438_v37  ;;  %2156 = vst [vmem:[#allocation2 + $0x24] sm:$0xff] %v2439_v38 }
 0x3cf   :  { %v2480_v40 = vpop.f32.mrf.mxu1 }
 0x3d1   :  { %v2481_v42 = vpop.f32.mrf.mxu1 }
 0x3d2   :  { %v2482_v43 = vadd.f32 %v2481_v42, %v2480_v40 }
 0x3d3   :  { %v2483_v44 = vpop.f32.mrf.mxu1 }
 0x3d4   :  { %v2100_v45 = vadd.f32 %v2482_v43, %v1352_v41 }
 0x3d5   :  { %v2484_v46 = vpop.f32.mrf.mxu1 }
 0x3d6   :  { %v2437_v12 = vpack.c.bf16 %v2100_v45, %v2100_v45  ;;  %v2485_v47 = vadd.f32 %v2484_v46, %v2483_v44 }
 0x3d8   :  { %2154 = vst.msk [vmem:[#allocation2 + $0x18] sm:$0xf] %vm2153_vm1, %v2437_v12  ;;  %v2103_v48 = vadd.f32 %v2485_v47, %v1352_v41 }
 0x3da   :  { %v2441_v49 = vpack.c.bf16 %v2103_v48, %v2103_v48 }
 0x3dc   :  { %2158 = vst.msk [vmem:[#allocation2 + $0x34] sm:$0xf] %vm2153_vm1, %v2441_v49 }
 0x3ef   :  { %v2056_v54 = vpop.f32.mrf.mxu0 }
 0x3f0   :  { %v2057_v56 = vadd.f32 %v2056_v54, %v1344_v52 }
 0x3f1   :  { %v2058_v55 = vpop.f32.mrf.mxu0 }
 0x3f2   :  { %v2059_v57 = vadd.f32 %v2058_v55, %v1348_v53 }
 0x3f3   :  { %v2060_v58 = vpop.f32.mrf.mxu0 }
 0x3f4   :  { %v2436_v59 = vpack.c.bf16 %v2059_v57, %v2057_v56  ;;  %v2061_v62 = vadd.f32 %v2060_v58, %v1344_v52 }
 0x3f5   :  { %v2062_v60 = vpop.f32.mrf.mxu0 }
 0x3f6   :  { %2152 = vst [vmem:[#allocation2 + $0x10] sm:$0xff] %v2436_v59  ;;  %v2063_v63 = vadd.f32 %v2062_v60, %v1348_v53 }
 0x3f8   :  { %v2440_v1 = vpack.c.bf16 %v2063_v63, %v2061_v62 }
 0x3fa   :  { %2157 = vst [vmem:[#allocation2 + $0x2c] sm:$0xff] %v2440_v1 }
 0x3fb   :  { %2858 = shalt.err (!%p2855_p4)
}
 0x3fc   :  { %s2871_s13 = smov 448   ;;  %s2872_s14 = smov 28  }
 0x3fd   :  { %2170 = dma.vmem_to_hbm [thread:$0]  %s2165_s8, 896, %s3721_s9, [#allocation3], %s2871_s13, %s2871_s13, %s2872_s14  }
 0x3fe   :  { %2867 = dma.done.wait [#allocation3], 896  }
 0x3ff   :  { %2868 = vsyncadd [#allocation3], 4294966400 }
 0x400   :  { %2174 = vsyncpa [#allocation3], 1 }

</bundles_post_ra>
